<compile_context>
chip_gen: v7x
topology: tpu7x:2x2x1
jax: 0.10.0
libtpu: 0.0.40
codegen_flags: <defaults>
</compile_context>

<pallas_src>
import functools

import jax
import jax.numpy as jnp
from jax.experimental import pallas as pl
from jax.experimental.pallas import tpu as pltpu

# Pack all taps into a single MXU matmul whenever kh*kw*Cin is small enough.
PACK_K_MAX = 256


# ------------------------------ helpers ------------------------------------- #
def _pick_row_tile(Ho, Wo, target_rows=128):
    """Largest row tile with row_tile | Ho, (row_tile*Wo) % 8 == 0 and
    row_tile*Wo <= target_rows (keeps the f32 accumulator at <= ~128 rows)."""
    divs = [t for t in range(1, Ho + 1) if Ho % t == 0]
    ok = [t for t in divs if (t * Wo) % 8 == 0]
    if not ok:
        # TODO(synk): Wo % 8 != 0 maps (7/14/28) fall back to one full-image
        # block -> masked partial stores; repack lane-dense if this gets hot.
        return Ho
    under = [t for t in ok if t * Wo <= target_rows]
    return max(under) if under else min(ok)


def _fold_bn(gamma, beta, mean, var, conv_bias, eps=1e-5):
    """Eval-mode BN folded with the conv bias: scale for weights, (1,C) bias."""
    s = gamma / jnp.sqrt(var + eps)
    b = s * (conv_bias - mean) + beta
    return s, b.reshape(1, -1).astype(jnp.float32)


# ----------------------------- Pallas kernel -------------------------------- #
def _fused_conv_kernel(x_ref, w_ref, b_ref, *rest, kh, kw, row_tile, Wo,
                       apply_relu, sc_mode):
    """One grid step: rows = row_tile*Wo output pixels of a stride-1 VALID
    kh x kw conv  (+ folded BN bias, + fused shortcut, + ReLU).

    x_ref : (Hin, Win, Cin)      bf16 spatially padded image (one batch elem)
    w_ref : (kh*kw*Cin, Cout)    bf16, BN scale folded, tap-major/channel-minor
    b_ref : (1, Cout)            f32 folded bias
    rest  : [sc_ref (rows,C_sc), [wsc_ref (C_sc,Cout)]], o_ref (rows, Cout)
    """
    if sc_mode == "matmul":
        sc_ref, wsc_ref, o_ref = rest
    elif sc_mode == "add":
        sc_ref, o_ref = rest
    else:
        (o_ref,) = rest

    cin = x_ref.shape[-1]
    cout = o_ref.shape[-1]
    rows = row_tile * Wo
    ext = row_tile + kh - 1
    row0 = pl.multiple_of(pl.program_id(1) * row_tile, row_tile)

    # Load the row block once; build the kw dx-shifted slabs from it (dx shift
    # hoisted out of the dy loop), then take the kh dy slices (free outer-dim
    # slices) from each slab.
    block = x_ref[pl.ds(row0, ext), :, :]                     # (ext, Win, Cin)
    slabs = [block[:, dx:dx + Wo, :] for dx in range(kw)]     # kw sublane shifts
    pieces = [slabs[dx][dy:dy + row_tile].reshape(rows, cin)
              for dy in range(kh) for dx in range(kw)]

    k_packed = kh * kw * cin
    if k_packed <= PACK_K_MAX:
        # Pack all taps along the contraction dim -> ONE MXU matmul.
        patch = pieces[0] if len(pieces) == 1 else jnp.concatenate(pieces, -1)
        acc = jnp.dot(patch, w_ref[...], preferred_element_type=jnp.float32)
    else:
        # Wide-channel fallback: per-tap accumulation (K already lane-dense).
        acc = jnp.zeros((rows, cout), jnp.float32)
        for t, piece in enumerate(pieces):
            acc = acc + jnp.dot(piece, w_ref[pl.ds(t * cin, cin), :],
                                preferred_element_type=jnp.float32)

    acc = acc + b_ref[...]

    if sc_mode == "matmul":       # fused 1x1-conv (+BN) projection shortcut
        acc = acc + jnp.dot(sc_ref[...].astype(wsc_ref.dtype), wsc_ref[...],
                            preferred_element_type=jnp.float32)
    elif sc_mode == "add":        # identity shortcut (exact f32 add)
        acc = acc + sc_ref[...].astype(jnp.float32)

    if apply_relu:
        acc = jnp.maximum(acc, 0.0)
    o_ref[...] = acc.astype(o_ref.dtype)


def fused_conv_bn_act(x_img, w_packed, bias, *, kh, kw, Ho, Wo, apply_relu,
                      out_dtype, sc_in=None, sc_w=None, sc_mode=None):
    """Stride-1 VALID kh x kw conv + folded-BN bias (+ fused shortcut) + ReLU.

    x_img    : (N, Hin, Win, Cin) bf16, spatially padded, natural channels
    w_packed : (kh*kw*Cin, Cout)  bf16
    bias     : (1, Cout)          f32
    sc_in    : (N, Ho*Wo, C_sc) or None  (shortcut: raw add or 1x1 matmul)
    sc_w     : (C_sc, Cout) bf16 or None (1x1 shortcut weight, BN folded)
    returns  : (N, Ho*Wo, Cout) out_dtype
    """
    N, Hin, Win, Cin = x_img.shape
    K, Cout = w_packed.shape
    assert K == kh * kw * Cin
    assert Hin >= Ho + kh - 1 and Win >= Wo + kw - 1
    assert sc_mode in (None, "add", "matmul")

    row_tile = _pick_row_tile(Ho, Wo)
    rows = row_tile * Wo
    grid = (N, Ho // row_tile)

    # Whole (small) padded image resident in VMEM; re-fetched only when n
    # changes (r is the fast grid axis).
    # TODO(synk): for large images tile spatially with halos / manual DMA, and
    # use 256-wide K/N matmul tiles when Cin/Cout >= 256 (v6e/v7x MXU).
    in_specs = [
        pl.BlockSpec((None, Hin, Win, Cin), lambda n, r: (n, 0, 0, 0)),
        pl.BlockSpec((K, Cout), lambda n, r: (0, 0)),
        pl.BlockSpec((1, Cout), lambda n, r: (0, 0)),
    ]
    args = [x_img, w_packed, bias]
    if sc_mode is not None:
        c_sc = sc_in.shape[-1]
        in_specs.append(
            pl.BlockSpec((None, rows, c_sc), lambda n, r: (n, r, 0)))
        args.append(sc_in)
        if sc_mode == "matmul":
            in_specs.append(pl.BlockSpec(sc_w.shape, lambda n, r: (0, 0)))
            args.append(sc_w)

    kernel = functools.partial(
        _fused_conv_kernel, kh=kh, kw=kw, row_tile=row_tile, Wo=Wo,
        apply_relu=apply_relu, sc_mode=sc_mode)

    return pl.pallas_call(
        kernel,
        out_shape=jax.ShapeDtypeStruct((N, Ho * Wo, Cout), out_dtype),
        grid_spec=pltpu.PrefetchScalarGridSpec(
            num_scalar_prefetch=0,
            grid=grid,
            in_specs=in_specs,
            out_specs=pl.BlockSpec((None, rows, Cout), lambda n, r: (n, r, 0)),
        ),
        compiler_params=pltpu.CompilerParams(
            dimension_semantics=("parallel", "parallel"),
            vmem_limit_bytes=32 * 1024 * 1024),
    )(*args)


# ------------------------------- forward ------------------------------------ #
def residual_block_forward(x_nchw, params, stride):
    """Forward pass of the PyTorch ResidualBlock (eval-mode BatchNorm)."""
    # TODO(synk): only stride in {1, 2} implemented (2 via space-to-depth);
    #             generalize with an s x s phase decomposition if ever needed.
    assert stride in (1, 2)
    x = jnp.transpose(x_nchw, (0, 2, 3, 1)).astype(jnp.float32)   # NHWC
    N, H, W, Cin = x.shape
    Cout = params["w1"].shape[0]
    Ho = (H - 1) // stride + 1
    Wo = (W - 1) // stride + 1

    # ---- fold eval-mode BN into conv weights / biases ----
    s1, b1 = _fold_bn(params["bn1_g"], params["bn1_b"], params["bn1_m"],
                      params["bn1_v"], params["b1"])
    s2, b2 = _fold_bn(params["bn2_g"], params["bn2_b"], params["bn2_m"],
                      params["bn2_v"], params["b2"])
    w1_hwio = jnp.transpose(params["w1"], (2, 3, 1, 0)) * s1      # (3,3,Ci,Co)
    w2_hwio = jnp.transpose(params["w2"], (2, 3, 1, 0)) * s2      # (3,3,Co,Co)

    # ---- conv1 (+bn1+relu): input and tap-packed weights ----
    if stride == 1:
        x_in = jnp.pad(x, ((0, 0), (1, 1), (1, 1), (0, 0))).astype(jnp.bfloat16)
        w1_packed = w1_hwio.reshape(9 * Cin, Cout).astype(jnp.bfloat16)
        kh1 = kw1 = 3
    else:
        # stride-2 3x3 conv == stride-1 2x2 conv over a space-to-depth input.
        xp = jnp.pad(x, ((0, 0), (1, 1 + (H + 2) % 2), (1, 1 + (W + 2) % 2),
                         (0, 0)))
        He, We = xp.shape[1], xp.shape[2]
        s2d = xp.reshape(N, He // 2, 2, We // 2, 2, Cin)
        s2d = jnp.transpose(s2d, (0, 1, 3, 2, 4, 5))
        s2d = s2d.reshape(N, He // 2, We // 2, 4 * Cin)
        x_in = s2d.astype(jnp.bfloat16)
        we = jnp.pad(w1_hwio, ((0, 1), (0, 1), (0, 0), (0, 0)))   # (4,4,Ci,Co)
        we = we.reshape(2, 2, 2, 2, Cin, Cout)                    # (DY,py,DX,px)
        we = jnp.transpose(we, (0, 2, 1, 3, 4, 5))                # (DY,DX,py,px)
        w1_packed = we.reshape(2 * 2 * 4 * Cin, Cout).astype(jnp.bfloat16)
        kh1 = kw1 = 2

    h = fused_conv_bn_act(x_in, w1_packed, b1, kh=kh1, kw=kw1, Ho=Ho, Wo=Wo,
                          apply_relu=True, out_dtype=jnp.bfloat16)

    # ---- shortcut (fused into the conv2 kernel) ----
    if stride != 1 or Cin != Cout:
        s_sc, b_sc = _fold_bn(params["bn_sc_g"], params["bn_sc_b"],
                              params["bn_sc_m"], params["bn_sc_v"],
                              params["b_sc"])
        wsc = jnp.transpose(params["w_sc"], (2, 3, 1, 0)) * s_sc  # (1,1,Ci,Co)
        sc_w = wsc.reshape(Cin, Cout).astype(jnp.bfloat16)
        if stride == 2:
            # x[:, ::2, ::2, :] == space-to-depth phase (py=1, px=1): reuse the
            # already-built bf16 s2d tensor instead of re-gathering x.
            sc_in = x_in[:, :Ho, :Wo, 3 * Cin:].reshape(N, Ho * Wo, Cin)
        else:
            sc_in = x.reshape(N, H * W, Cin)          # cast to bf16 in-kernel
        bias2 = b2 + b_sc                             # fold both biases
        sc_mode = "matmul"
    else:
        sc_in = x.reshape(N, H * W, Cin)              # identity residual (f32)
        sc_w = None
        bias2 = b2
        sc_mode = "add"

    # ---- conv2 (+bn2) + shortcut + relu ----
    h_pad = jnp.pad(h.reshape(N, Ho, Wo, Cout),
                    ((0, 0), (1, 1), (1, 1), (0, 0)))
    w2_packed = w2_hwio.reshape(9 * Cout, Cout).astype(jnp.bfloat16)
    y = fused_conv_bn_act(h_pad, w2_packed, bias2, kh=3, kw=3, Ho=Ho, Wo=Wo,
                          apply_relu=True, out_dtype=jnp.float32,
                          sc_in=sc_in, sc_w=sc_w, sc_mode=sc_mode)

    # natural Cout (no channel padding) -> no post-kernel slice pass.
    return jnp.transpose(y.reshape(N, Ho, Wo, Cout), (0, 3, 1, 2))  # NCHW


# --------------------------- pure-JAX reference ------------------------------ #
def ref_forward(x_nchw, params, stride, eps=1e-5):
    x = jnp.transpose(x_nchw, (0, 2, 3, 1)).astype(jnp.float32)

    def conv(x, w_oihw, b, s, pad):
        w = jnp.transpose(w_oihw, (2, 3, 1, 0))  # HWIO
        y = jax.lax.conv_general_dilated(
            x, w, (s, s), [(pad, pad), (pad, pad)],
            dimension_numbers=("NHWC", "HWIO", "NHWC"))
        return y + b.reshape(1, 1, 1, -1)

    def bn(x, g, bt, m, v):
        return g * (x - m) / jnp.sqrt(v + eps) + bt

    Cin, Cout = x.shape[-1], params["w1"].shape[0]
    if stride != 1 or Cin != Cout:
        r = bn(conv(x, params["w_sc"], params["b_sc"], stride, 0),
               params["bn_sc_g"], params["bn_sc_b"],
               params["bn_sc_m"], params["bn_sc_v"])
    else:
        r = x
    h = jax.nn.relu(bn(conv(x, params["w1"], params["b1"], stride, 1),
                       params["bn1_g"], params["bn1_b"],
                       params["bn1_m"], params["bn1_v"]))
    y = bn(conv(h, params["w2"], params["b2"], 1, 1),
           params["bn2_g"], params["bn2_b"], params["bn2_m"], params["bn2_v"])
    y = jax.nn.relu(y + r)
    return jnp.transpose(y, (0, 3, 1, 2))


# --------------------------------- main -------------------------------------- #
def make_params(key, cin, cout):
    ks = jax.random.split(key, 8)
    p = {
        "w1": 0.1 * jax.random.normal(ks[0], (cout, cin, 3, 3), jnp.float32),
        "b1": 0.05 * jax.random.normal(ks[1], (cout,), jnp.float32),
        "w2": 0.1 * jax.random.normal(ks[2], (cout, cout, 3, 3), jnp.float32),
        "b2": 0.05 * jax.random.normal(ks[3], (cout,), jnp.float32),
        "w_sc": 0.1 * jax.random.normal(ks[4], (cout, cin, 1, 1), jnp.float32),
        "b_sc": 0.05 * jax.random.normal(ks[5], (cout,), jnp.float32),
    }
    # eval-mode BN: running_mean=0, running_var=1, gamma/beta lightly perturbed
    for name, k in (("bn1", ks[6]), ("bn2", ks[7]), ("bn_sc", ks[0])):
        p[f"{name}_g"] = 1.0 + 0.1 * jax.random.normal(k, (cout,), jnp.float32)
        p[f"{name}_b"] = 0.02 * jax.random.normal(
            jax.random.fold_in(k, 1), (cout,), jnp.float32)
        p[f"{name}_m"] = jnp.zeros((cout,), jnp.float32)
        p[f"{name}_v"] = jnp.ones((cout,), jnp.float32)
    return p


if __name__ == "__main__":
    key = jax.random.PRNGKey(0)
    kx, kp = jax.random.split(key)

    fwd = jax.jit(residual_block_forward, static_argnums=(2,))

    # 1) downsampling block: stride=2, Cin=4 -> Cout=8 (conv shortcut path)
    N, Cin, Cout, H, W, stride = 2, 4, 8, 16, 16, 2
    x = jax.random.normal(kx, (N, Cin, H, W), jnp.float32)  # NCHW like PyTorch
    params = make_params(kp, Cin, Cout)
    out = jax.block_until_ready(fwd(x, params, stride))
    ref = jax.block_until_ready(ref_forward(x, params, stride))
    assert out.shape == (N, Cout, H // stride, W // stride), out.shape
    err = float(jnp.max(jnp.abs(out - ref)))
    assert err < 5e-2, f"stride-2 block max err {err}"

    # 2) identity-shortcut block: stride=1, Cin == Cout
    C = 8
    x2 = jax.random.normal(jax.random.fold_in(kx, 1), (N, C, H, W), jnp.float32)
    params2 = make_params(jax.random.fold_in(kp, 1), C, C)
    out2 = jax.block_until_ready(fwd(x2, params2, 1))
    ref2 = jax.block_until_ready(ref_forward(x2, params2, 1))
    assert out2.shape == (N, C, H, W), out2.shape
    err2 = float(jnp.max(jnp.abs(out2 - ref2)))
    assert err2 < 5e-2, f"stride-1 block max err {err2}"

    print("KERNEL_OK")
</pallas_src>

<mosaic_0001>
module attributes {stable_mosaic.version = 11 : i64} {
  func.func @_fused_conv_kernel(%arg0: i32, %arg1: i32, %arg2: memref<1x9x9x16xbf16, #tpu.memory_space<vmem>>, %arg3: memref<64x8xbf16, #tpu.memory_space<vmem>>, %arg4: memref<1x8xf32, #tpu.memory_space<vmem>>, %arg5: memref<1x64x8xbf16, #tpu.memory_space<vmem>>) attributes {dimension_semantics = [#tpu.dimension_semantics<parallel>, #tpu.dimension_semantics<parallel>], iteration_bounds = array<i64: 2, 1>, scalar_prefetch = 0 : i64, scratch_operands = 0 : i64, tpu.core_type = #tpu.core_type<tc>, window_params = [{transform_indices = @transform_0, window_bounds = array<i64: 1, 9, 9, 16>}, {pipeline_mode = #tpu.pipeline_mode<synchronous>, transform_indices = @transform_1, window_bounds = array<i64: 64, 8>}, {pipeline_mode = #tpu.pipeline_mode<synchronous>, transform_indices = @transform_2, window_bounds = array<i64: 1, 8>}, {transform_indices = @transform_3, window_bounds = array<i64: 1, 64, 8>}]} {
    %c8_i32 = arith.constant 8 : i32
    %0 = arith.muli %arg1, %c8_i32 : i32
    %1 = tpu.assume_multiple %0, 8 : i32
    %c0 = arith.constant 0 : index
    %2 = arith.index_cast %1 : i32 to index
    %c0_0 = arith.constant 0 : index
    %c0_1 = arith.constant 0 : index
    %3 = vector.load %arg2[%c0, %2, %c0_0, %c0_1] : memref<1x9x9x16xbf16, #tpu.memory_space<vmem>>, vector<1x9x9x16xbf16>
    %4 = vector.shape_cast %3 : vector<1x9x9x16xbf16> to vector<9x9x16xbf16>
    %5 = vector.extract_strided_slice %4 {offsets = [0, 0, 0], sizes = [9, 8, 16], strides = [1, 1, 1]} : vector<9x9x16xbf16> to vector<9x8x16xbf16>
    %6 = vector.extract_strided_slice %4 {offsets = [0, 1, 0], sizes = [9, 8, 16], strides = [1, 1, 1]} : vector<9x9x16xbf16> to vector<9x8x16xbf16>
    %7 = vector.extract_strided_slice %5 {offsets = [0, 0, 0], sizes = [8, 8, 16], strides = [1, 1, 1]} : vector<9x8x16xbf16> to vector<8x8x16xbf16>
    %8 = vector.shape_cast %7 : vector<8x8x16xbf16> to vector<64x16xbf16>
    %9 = vector.extract_strided_slice %6 {offsets = [0, 0, 0], sizes = [8, 8, 16], strides = [1, 1, 1]} : vector<9x8x16xbf16> to vector<8x8x16xbf16>
    %10 = vector.shape_cast %9 : vector<8x8x16xbf16> to vector<64x16xbf16>
    %11 = vector.extract_strided_slice %5 {offsets = [1, 0, 0], sizes = [8, 8, 16], strides = [1, 1, 1]} : vector<9x8x16xbf16> to vector<8x8x16xbf16>
    %12 = vector.shape_cast %11 : vector<8x8x16xbf16> to vector<64x16xbf16>
    %13 = vector.extract_strided_slice %6 {offsets = [1, 0, 0], sizes = [8, 8, 16], strides = [1, 1, 1]} : vector<9x8x16xbf16> to vector<8x8x16xbf16>
    %14 = vector.shape_cast %13 : vector<8x8x16xbf16> to vector<64x16xbf16>
    %15 = tpu.concatenate %8, %10, %12, %14 in 1 : vector<64x16xbf16>, vector<64x16xbf16>, vector<64x16xbf16>, vector<64x16xbf16> -> vector<64x64xbf16>
    %c0_2 = arith.constant 0 : index
    %c0_3 = arith.constant 0 : index
    %16 = vector.load %arg3[%c0_2, %c0_3] : memref<64x8xbf16, #tpu.memory_space<vmem>>, vector<64x8xbf16>
    %cst = arith.constant dense<0.000000e+00> : vector<64x8xf32>
    %17 = tpu.matmul %15, %16, %cst {dimension_numbers = #tpu.dot_dimension_numbers<[1], [0], [0], [1], [0, 0, 1, 1], [], []>} : vector<64x64xbf16>, vector<64x8xbf16>, vector<64x8xf32> -> vector<64x8xf32>
    %c0_4 = arith.constant 0 : index
    %c0_5 = arith.constant 0 : index
    %18 = vector.load %arg4[%c0_4, %c0_5] : memref<1x8xf32, #tpu.memory_space<vmem>>, vector<1x8xf32>
    %19 = vector.broadcast %18 : vector<1x8xf32> to vector<64x8xf32>
    %20 = arith.addf %17, %19 : vector<64x8xf32>
    %cst_6 = arith.constant 0.000000e+00 : f32
    %21 = vector.broadcast %cst_6 : f32 to vector<64x8xf32>
    %22 = arith.maximumf %20, %21 : vector<64x8xf32>
    %23 = arith.truncf %22 : vector<64x8xf32> to vector<64x8xbf16>
    %c0_7 = arith.constant 0 : index
    %c0_8 = arith.constant 0 : index
    %c0_9 = arith.constant 0 : index
    %24 = vector.load %arg5[%c0_7, %c0_8, %c0_9] : memref<1x64x8xbf16, #tpu.memory_space<vmem>>, vector<1x64x8xbf16>
    %25 = vector.shape_cast %24 : vector<1x64x8xbf16> to vector<64x8xbf16>
    %26 = vector.shape_cast %23 : vector<64x8xbf16> to vector<1x64x8xbf16>
    tpu.vector_store %arg5[%c0_7, %c0_8, %c0_9], %26 {strides = array<i32>} : memref<1x64x8xbf16, #tpu.memory_space<vmem>>, vector<1x64x8xbf16>,
    return
  }
  func.func @transform_0(%arg0: i32, %arg1: i32) -> (i32, i32, i32, i32) {
    %c0_i32 = arith.constant 0 : i32
    %c0_i32_0 = arith.constant 0 : i32
    %c0_i32_1 = arith.constant 0 : i32
    %c0_i32_2 = arith.constant 0 : i32
    return %arg0, %c0_i32, %c0_i32_0, %c0_i32_1 : i32, i32, i32, i32
  }
  func.func @transform_1(%arg0: i32, %arg1: i32) -> (i32, i32) {
    %c0_i32 = arith.constant 0 : i32
    %c0_i32_0 = arith.constant 0 : i32
    %c0_i32_1 = arith.constant 0 : i32
    return %c0_i32, %c0_i32_0 : i32, i32
  }
  func.func @transform_2(%arg0: i32, %arg1: i32) -> (i32, i32) {
    %c0_i32 = arith.constant 0 : i32
    %c0_i32_0 = arith.constant 0 : i32
    %c0_i32_1 = arith.constant 0 : i32
    return %c0_i32, %c0_i32_0 : i32, i32
  }
  func.func @transform_3(%arg0: i32, %arg1: i32) -> (i32, i32, i32) {
    %c0_i32 = arith.constant 0 : i32
    %c0_i32_0 = arith.constant 0 : i32
    return %arg0, %arg1, %c0_i32 : i32, i32, i32
  }
}

module attributes {stable_mosaic.version = 11 : i64} {
  func.func @_fused_conv_kernel(%arg0: i32, %arg1: i32, %arg2: memref<1x10x10x8xbf16, #tpu.memory_space<vmem>>, %arg3: memref<72x8xbf16, #tpu.memory_space<vmem>>, %arg4: memref<1x8xf32, #tpu.memory_space<vmem>>, %arg5: memref<1x64x4xbf16, #tpu.memory_space<vmem>>, %arg6: memref<4x8xbf16, #tpu.memory_space<vmem>>, %arg7: memref<1x64x8xf32, #tpu.memory_space<vmem>>) attributes {dimension_semantics = [#tpu.dimension_semantics<parallel>, #tpu.dimension_semantics<parallel>], iteration_bounds = array<i64: 2, 1>, scalar_prefetch = 0 : i64, scratch_operands = 0 : i64, tpu.core_type = #tpu.core_type<tc>, window_params = [{transform_indices = @transform_0, window_bounds = array<i64: 1, 10, 10, 8>}, {pipeline_mode = #tpu.pipeline_mode<synchronous>, transform_indices = @transform_1, window_bounds = array<i64: 72, 8>}, {pipeline_mode = #tpu.pipeline_mode<synchronous>, transform_indices = @transform_2, window_bounds = array<i64: 1, 8>}, {transform_indices = @transform_3, window_bounds = array<i64: 1, 64, 4>}, {pipeline_mode = #tpu.pipeline_mode<synchronous>, transform_indices = @transform_4, window_bounds = array<i64: 4, 8>}, {transform_indices = @transform_5, window_bounds = array<i64: 1, 64, 8>}]} {
    %c8_i32 = arith.constant 8 : i32
    %0 = arith.muli %arg1, %c8_i32 : i32
    %1 = tpu.assume_multiple %0, 8 : i32
    %c0 = arith.constant 0 : index
    %2 = arith.index_cast %1 : i32 to index
    %c0_0 = arith.constant 0 : index
    %c0_1 = arith.constant 0 : index
    %3 = vector.load %arg2[%c0, %2, %c0_0, %c0_1] : memref<1x10x10x8xbf16, #tpu.memory_space<vmem>>, vector<1x10x10x8xbf16>
    %4 = vector.shape_cast %3 : vector<1x10x10x8xbf16> to vector<10x10x8xbf16>
    %5 = vector.extract_strided_slice %4 {offsets = [0, 0, 0], sizes = [10, 8, 8], strides = [1, 1, 1]} : vector<10x10x8xbf16> to vector<10x8x8xbf16>
    %6 = vector.extract_strided_slice %4 {offsets = [0, 1, 0], sizes = [10, 8, 8], strides = [1, 1, 1]} : vector<10x10x8xbf16> to vector<10x8x8xbf16>
    %7 = vector.extract_strided_slice %4 {offsets = [0, 2, 0], sizes = [10, 8, 8], strides = [1, 1, 1]} : vector<10x10x8xbf16> to vector<10x8x8xbf16>
    %8 = vector.extract_strided_slice %5 {offsets = [0, 0, 0], sizes = [8, 8, 8], strides = [1, 1, 1]} : vector<10x8x8xbf16> to vector<8x8x8xbf16>
    %9 = vector.shape_cast %8 : vector<8x8x8xbf16> to vector<64x8xbf16>
    %10 = vector.extract_strided_slice %6 {offsets = [0, 0, 0], sizes = [8, 8, 8], strides = [1, 1, 1]} : vector<10x8x8xbf16> to vector<8x8x8xbf16>
    %11 = vector.shape_cast %10 : vector<8x8x8xbf16> to vector<64x8xbf16>
    %12 = vector.extract_strided_slice %7 {offsets = [0, 0, 0], sizes = [8, 8, 8], strides = [1, 1, 1]} : vector<10x8x8xbf16> to vector<8x8x8xbf16>
    %13 = vector.shape_cast %12 : vector<8x8x8xbf16> to vector<64x8xbf16>
    %14 = vector.extract_strided_slice %5 {offsets = [1, 0, 0], sizes = [8, 8, 8], strides = [1, 1, 1]} : vector<10x8x8xbf16> to vector<8x8x8xbf16>
    %15 = vector.shape_cast %14 : vector<8x8x8xbf16> to vector<64x8xbf16>
    %16 = vector.extract_strided_slice %6 {offsets = [1, 0, 0], sizes = [8, 8, 8], strides = [1, 1, 1]} : vector<10x8x8xbf16> to vector<8x8x8xbf16>
    %17 = vector.shape_cast %16 : vector<8x8x8xbf16> to vector<64x8xbf16>
    %18 = vector.extract_strided_slice %7 {offsets = [1, 0, 0], sizes = [8, 8, 8], strides = [1, 1, 1]} : vector<10x8x8xbf16> to vector<8x8x8xbf16>
    %19 = vector.shape_cast %18 : vector<8x8x8xbf16> to vector<64x8xbf16>
    %20 = vector.extract_strided_slice %5 {offsets = [2, 0, 0], sizes = [8, 8, 8], strides = [1, 1, 1]} : vector<10x8x8xbf16> to vector<8x8x8xbf16>
    %21 = vector.shape_cast %20 : vector<8x8x8xbf16> to vector<64x8xbf16>
    %22 = vector.extract_strided_slice %6 {offsets = [2, 0, 0], sizes = [8, 8, 8], strides = [1, 1, 1]} : vector<10x8x8xbf16> to vector<8x8x8xbf16>
    %23 = vector.shape_cast %22 : vector<8x8x8xbf16> to vector<64x8xbf16>
    %24 = vector.extract_strided_slice %7 {offsets = [2, 0, 0], sizes = [8, 8, 8], strides = [1, 1, 1]} : vector<10x8x8xbf16> to vector<8x8x8xbf16>
    %25 = vector.shape_cast %24 : vector<8x8x8xbf16> to vector<64x8xbf16>
    %26 = tpu.concatenate %9, %11, %13, %15, %17, %19, %21, %23, %25 in 1 : vector<64x8xbf16>, vector<64x8xbf16>, vector<64x8xbf16>, vector<64x8xbf16>, vector<64x8xbf16>, vector<64x8xbf16>, vector<64x8xbf16>, vector<64x8xbf16>, vector<64x8xbf16> -> vector<64x72xbf16>
    %c0_2 = arith.constant 0 : index
    %c0_3 = arith.constant 0 : index
    %27 = vector.load %arg3[%c0_2, %c0_3] : memref<72x8xbf16, #tpu.memory_space<vmem>>, vector<72x8xbf16>
    %cst = arith.constant dense<0.000000e+00> : vector<64x8xf32>
    %28 = tpu.matmul %26, %27, %cst {dimension_numbers = #tpu.dot_dimension_numbers<[1], [0], [0], [1], [0, 0, 1, 1], [], []>} : vector<64x72xbf16>, vector<72x8xbf16>, vector<64x8xf32> -> vector<64x8xf32>
    %c0_4 = arith.constant 0 : index
    %c0_5 = arith.constant 0 : index
    %29 = vector.load %arg4[%c0_4, %c0_5] : memref<1x8xf32, #tpu.memory_space<vmem>>, vector<1x8xf32>
    %30 = vector.broadcast %29 : vector<1x8xf32> to vector<64x8xf32>
    %31 = arith.addf %28, %30 : vector<64x8xf32>
    %c0_6 = arith.constant 0 : index
    %c0_7 = arith.constant 0 : index
    %c0_8 = arith.constant 0 : index
    %32 = vector.load %arg5[%c0_6, %c0_7, %c0_8] : memref<1x64x4xbf16, #tpu.memory_space<vmem>>, vector<1x64x4xbf16>
    %33 = vector.shape_cast %32 : vector<1x64x4xbf16> to vector<64x4xbf16>
    %c0_9 = arith.constant 0 : index
    %c0_10 = arith.constant 0 : index
    %34 = vector.load %arg6[%c0_9, %c0_10] : memref<4x8xbf16, #tpu.memory_space<vmem>>, vector<4x8xbf16>
    %cst_11 = arith.constant dense<0.000000e+00> : vector<64x8xf32>
    %35 = tpu.matmul %33, %34, %cst_11 {dimension_numbers = #tpu.dot_dimension_numbers<[1], [0], [0], [1], [0, 0, 1, 1], [], []>} : vector<64x4xbf16>, vector<4x8xbf16>, vector<64x8xf32> -> vector<64x8xf32>
    %36 = arith.addf %31, %35 : vector<64x8xf32>
    %cst_12 = arith.constant 0.000000e+00 : f32
    %37 = vector.broadcast %cst_12 : f32 to vector<64x8xf32>
    %38 = arith.maximumf %36, %37 : vector<64x8xf32>
    %c0_13 = arith.constant 0 : index
    %c0_14 = arith.constant 0 : index
    %c0_15 = arith.constant 0 : index
    %39 = vector.load %arg7[%c0_13, %c0_14, %c0_15] : memref<1x64x8xf32, #tpu.memory_space<vmem>>, vector<1x64x8xf32>
    %40 = vector.shape_cast %39 : vector<1x64x8xf32> to vector<64x8xf32>
    %41 = vector.shape_cast %38 : vector<64x8xf32> to vector<1x64x8xf32>
    tpu.vector_store %arg7[%c0_13, %c0_14, %c0_15], %41 {strides = array<i32>} : memref<1x64x8xf32, #tpu.memory_space<vmem>>, vector<1x64x8xf32>,
    return
  }
  func.func @transform_0(%arg0: i32, %arg1: i32) -> (i32, i32, i32, i32) {
    %c0_i32 = arith.constant 0 : i32
    %c0_i32_0 = arith.constant 0 : i32
    %c0_i32_1 = arith.constant 0 : i32
    %c0_i32_2 = arith.constant 0 : i32
    return %arg0, %c0_i32, %c0_i32_0, %c0_i32_1 : i32, i32, i32, i32
  }
  func.func @transform_1(%arg0: i32, %arg1: i32) -> (i32, i32) {
    %c0_i32 = arith.constant 0 : i32
    %c0_i32_0 = arith.constant 0 : i32
    %c0_i32_1 = arith.constant 0 : i32
    return %c0_i32, %c0_i32_0 : i32, i32
  }
  func.func @transform_2(%arg0: i32, %arg1: i32) -> (i32, i32) {
    %c0_i32 = arith.constant 0 : i32
    %c0_i32_0 = arith.constant 0 : i32
    %c0_i32_1 = arith.constant 0 : i32
    return %c0_i32, %c0_i32_0 : i32, i32
  }
  func.func @transform_3(%arg0: i32, %arg1: i32) -> (i32, i32, i32) {
    %c0_i32 = arith.constant 0 : i32
    %c0_i32_0 = arith.constant 0 : i32
    return %arg0, %arg1, %c0_i32 : i32, i32, i32
  }
  func.func @transform_4(%arg0: i32, %arg1: i32) -> (i32, i32) {
    %c0_i32 = arith.constant 0 : i32
    %c0_i32_0 = arith.constant 0 : i32
    %c0_i32_1 = arith.constant 0 : i32
    return %c0_i32, %c0_i32_0 : i32, i32
  }
  func.func @transform_5(%arg0: i32, %arg1: i32) -> (i32, i32, i32) {
    %c0_i32 = arith.constant 0 : i32
    %c0_i32_0 = arith.constant 0 : i32
    return %arg0, %arg1, %c0_i32 : i32, i32, i32
  }
}

</mosaic_0001>

<bundles_post_ra>
// kernel: residual_block_forward.2
= control target key start
LH: loop header
LB: loop body
LE: loop exit
PB: predicated region body
PF: predicated region fallthrough
CT: control target
= control target key end

     0   :  { %s860_s12 = smov 0   ;;  %s862_s13 = smov 0   ;;  %s1063_s0 = inlined_call_operand.vmem [shape: bf16[2,9,9,16], index: 0, kind: input, shape index: {}]   ;;  %s1064_s1 = inlined_call_operand.vmem [shape: bf16[64,8], index: 1, kind: input, shape index: {}]   ;;  %s1065_s2 = inlined_call_operand.vmem [shape: f32[1,8], index: 2, kind: input, shape index: {}]   ;;  %s1066_s3 = inlined_call_operand.vmem [shape: bf16[2,64,8], index: 3, kind: output, shape index: {}]  }
   0x1   :  { %s864_s14 = smov 0  }
   0x2 LB: > { %s25_s15 = sadd.s32 1, %s831_s13  ;;  %p693_p0 = scmp.ge.s32.totalorder %s835_s14, 1  ;;  %s835_s14 = sphi %s864_s14, %s13_s14   ;;  %s831_s13 = sphi %s862_s13, %s1070_s13   ;;  %s827_s12 = sphi %s860_s12, %s1069_s12  }
   0x3   : > { %p27_p1 = scmp.ge.s32.totalorder %s25_s15, 2  ;;  %p151_p2 = scmp.lt.s32.totalorder %s835_s14, 3 }
   0x5   : > { %s1072_s15 = smov (%p27_p1, %s25_s15), 0  ;;  %p152_p3 = pnand %p693_p0, %p151_p2 }
   0x6   : > { %p179_p4 = scmp.lt.s32.totalorder (!%p152_p3), %s827_s12, 1  ;;  %v805_v0 = vld [vmem:[%s1064_s1] sm:$0xff] (!%p152_p3)   ;;  %vm217_vm0 = vsmask.f32 (!%p152_p3), 3328  ;;  %vm218_vm1 = vsmask.f32 (!%p152_p3), 7440 }
   0x7   : > { %155 = sbr.rel (%p152_p3) target bundleno = 391 (0x187), region = 32  ;;  %749 = vmatprep.subr.bf16.mxu0 (!%p152_p3), %v805_v0  ;;  %765 = vmatprep.subr.bf16.mxu1 (!%p152_p3), %v805_v0  ;;  %s837_s22 = smov (!%p152_p3), 32   ;;  %vm955_vm2 = vmor (!%p152_p3), %vm217_vm0, %vm218_vm1  ;;  %vm413_vm3 = vcmask (!%p152_p3), 130048   ;;  %vm435_vm4 = vcmask (!%p152_p3), 392192   ;;  %vm426_vm5 = vcmask (!%p152_p3), 261120   ;;  %vm483_vm6 = vcmask (!%p152_p3), 523264  }
   0x8   : > { %750 = vmatpush3.bf16.msra.mxu0 (!%p152_p3), %v805_v0  ;;  %769 = vmatpush3.bf16.msra.mxu1 (!%p152_p3), %v805_v0  ;;  %s838_s29 = smov (!%p152_p3), 16   ;;  %s839_s30 = smov (!%p152_p3), 48   ;;  %vm597_vm7 = vcmask (!%p152_p3), 60416  }
   0xe   : > { %s1074_s12 = smov (!%p179_p4, %s827_s12), 1 }
   0xf   : > { %s773_s18 = smul.u32 72, %s1074_s12  ;;  %s732_s6 = sshll.u32 %s1074_s12, 5 }
  0x10   : > { %s1036_s9 = scalar_lea.vmem %s1066_s3, %s732_s6 }
  0x11   : > { %s887_s21 = scalar_lea.vmem %s1063_s0, %s773_s18 }
  0x12   : > { %v890_v1 = vld [vmem:[%s887_s21 + $0x28] sm:$0xf]  ;;  %v893_v2 = vld [vmem:[%s887_s21 + $0x30] sm:$0xf]  ;;  %v912_v13 = vld [vmem:[%s887_s21 + $0x38] sm:$0xf] }
  0x13   : > { %v896_v3 = vld [vmem:[%s887_s21 + $0x8] sm:$0xf]  ;;  %v305_v4 = vshrl.u32 %v893_v2, 16  ;;  %v308_v5 = vshll.u32 %v893_v2, 16  ;;  %v707_v6 = vcombine.low %v890_v1, %v893_v2  ;;  %v291_v7 = vshrl.u32 %v890_v1, 16 }
  0x14   : > { %v904_v8 = vld [vmem:[%s887_s21 + $0x10] sm:$0xf]  ;;  %v294_v9 = vshll.u32 %v890_v1, 16  ;;  %v235_v17 = vshrl.u32 %v896_v3, 16  ;;  %v215_v18 = vld [vmem:[%s887_s21 + $0x40] sm:$0xf] }
  0x15   : > { %v249_v10 = vshrl.u32 %v904_v8, 16  ;;  %v252_v11 = vshll.u32 %v904_v8, 16  ;;  %v705_v12 = vcombine.low %v896_v3, %v904_v8  ;;  %v914_v14 = vrot.slane %v305_v4, 4  ;;  %396 = vrot.lane.b32.xlu1 %v707_v6, %s837_s22  ;;  %v928_v23 = vld [vmem:[%s887_s21 + $0x18] sm:$0xf]  ;;  %v808_v4 = vld [vmem:[%s1064_s1 + $0x8] sm:$0xff]  }
  0x16   : > { %v916_v15 = vrot.slane %v308_v5, 5  ;;  %v919_v16 = vrot.slane %v291_v7, 4  ;;  %v923_v19 = vrot.slane %v294_v9, 5  ;;  %v238_v22 = vshll.u32 %v896_v3, 16  ;;  %v933_v28 = vld [vmem:[%s887_s21 + $0x20] sm:$0xf]  ;;  %751 = vmatprep.subr.bf16.mxu0 %v808_v4  ;;  %766 = vmatprep.subr.bf16.mxu1 %v808_v4 }
  0x17   : > { %v251_v20 = vrot.slane %v249_v10, 4  ;;  %v254_v21 = vrot.slane %v252_v11, 5  ;;  %392 = vrot.lane.b32.xlu0 %v705_v12, %s837_s22  ;;  %v237_v24 = vrot.slane %v235_v17, 4  ;;  %v319_v25 = vshrl.u32 %v912_v13, 16  ;;  %v204_v33 = vld [vmem:[%s887_s21 + $0x14] sm:$0x1]  ;;  %752 = vmatpush3.bf16.msra.mxu0 %v808_v4 }
  0x18   : > { %v322_v26 = vshll.u32 %v912_v13, 16  ;;  %v333_v27 = vshrl.u32 %v215_v18, 16  ;;  %v240_v29 = vrot.slane %v238_v22, 5  ;;  %v336_v30 = vshll.u32 %v215_v18, 16  ;;  %v206_v38 = vld [vmem:[%s887_s21 + $0x1c] sm:$0x1]  ;;  %770 = vmatpush3.bf16.msra.mxu1 %v808_v4 }
  0x19   : > { %v708_v31 = vcombine.low %v912_v13, %v215_v18  ;;  %v263_v32 = vshrl.u32 %v928_v23, 16  ;;  %v266_v35 = vshll.u32 %v928_v23, 16  ;;  %v277_v36 = vshrl.u32 %v933_v28, 16  ;;  %v950_v43 = vld [vmem:[%s887_s21] sm:$0xf]  ;;  %v811_v10 = vld [vmem:[%s1064_s1 + $0x10] sm:$0xff]  }
  0x1a   : > { %v938_v34 = vrot.slane %v333_v27, 4  ;;  %v280_v37 = vshll.u32 %v933_v28, 16  ;;  %v944_v39 = vrot.slane %v336_v30, 5  ;;  %v706_v40 = vcombine.low %v928_v23, %v933_v28  ;;  %v200_v44 = vld [vmem:[%s887_s21 + $0x4] sm:$0x1]  ;;  %753 = vmatprep.subr.bf16.mxu0 %v811_v10  ;;  %767 = vmatprep.subr.bf16.mxu1 %v811_v10  ;;  %v812_v30 = vld [vmem:[%s1064_s1 + $0x18] sm:$0xff]  }
  0x1b   : > { %398 = vrot.lane.b32.xlu1 %v708_v31, %s837_s22  ;;  %v255_v41 = vor.u32 %v254_v21, %v251_v20  ;;  %v258_v42 = vshll.u32 %v204_v33, 16  ;;  %v265_v46 = vrot.slane %v263_v32, 4  ;;  %v268_v47 = vrot.slane %v266_v35, 5  ;;  %v202_v49 = vld [vmem:[%s887_s21 + $0xc] sm:$0x1]  ;;  %754 = vmatpush3.bf16.msra.mxu0 %v811_v10 }
  0x1c   : > { %v272_v48 = vshll.u32 %v206_v38, 16  ;;  %v221_v50 = vshrl.u32 %v950_v43, 16  ;;  %394 = vrot.lane.b32.xlu0 %v706_v40, %s837_s22  ;;  %v224_v53 = vshll.u32 %v950_v43, 16  ;;  %v230_v54 = vshll.u32 %v200_v44, 16  ;;  %v212_v55 = vld [vmem:[%s887_s21 + $0x34] sm:$0x1]  ;;  %771 = vmatpush3.bf16.msra.mxu1 %v811_v10 }
  0x1d   : > { %v256_v51 = vrot.slane %v255_v41, 4  ;;  %v260_v52 = vrot.slane %v258_v42, 5  ;;  %v269_v56 = vor.u32 %v268_v47, %v265_v46  ;;  %v241_v59 = vor.u32 %v240_v29, %v237_v24  ;;  %v214_v0 = vld [vmem:[%s887_s21 + $0x3c] sm:$0x1]  ;;  %v210_v29 = vld [vmem:[%s887_s21 + $0x2c] sm:$0x1]  ;;  %755 = vmatprep.subr.bf16.mxu0 %v812_v30  ;;  %768 = vmatprep.subr.bf16.mxu1 %v812_v30 }
  0x1e   : > { %v274_v57 = vrot.slane %v272_v48, 5  ;;  %v223_v58 = vrot.slane %v221_v50, 4  ;;  %v226_v61 = vrot.slane %v224_v53, 5  ;;  %v232_v62 = vrot.slane %v230_v54, 5  ;;  %v216_v44 = vld [vmem:[%s887_s21 + $0x44] sm:$0x1] }
  0x1f   : > { %v966_v60 = vsel %vm955_vm2, %v256_v51, %v260_v52  ;;  %v244_v63 = vshll.u32 %v202_v49, 16  ;;  %v270_v5 = vrot.slane %v269_v56, 4  ;;  %v242_v6 = vrot.slane %v241_v59, 4  ;;  %756 = vmatpush3.bf16.msra.mxu0 %v812_v30 }
  0x20   : > { %v311_v7 = vor.u32 %v916_v15, %v914_v14  ;;  %v314_v9 = vshll.u32 %v212_v55, 16  ;;  %v227_v11 = vor.u32 %v226_v61, %v223_v58  ;;  %v321_v17 = vrot.slane %v319_v25, 4  ;;  %v208_v14 = vld [vmem:[%s887_s21 + $0x24] sm:$0x1]  ;;  %772 = vmatpush3.bf16.msra.mxu1 %v812_v30 }
  0x21   : > { %v246_v12 = vrot.slane %v244_v63, 5  ;;  %v324_v18 = vrot.slane %v322_v26, 5  ;;  %v979_v20 = vsel %vm955_vm2, %v270_v5, %v274_v57  ;;  %v328_v24 = vshll.u32 %v214_v0, 16 }
  0x22   : > { %v312_v21 = vrot.slane %v311_v7, 4  ;;  %v316_v22 = vrot.slane %v314_v9, 5  ;;  %v702_v15 = vcombine.low %v966_v60, %v979_v20  ;;  %v228_v27 = vrot.slane %v227_v11, 4 }
  0x23   : > { %v247_v25 = vsel %vm955_vm2, %v242_v6, %v246_v12  ;;  %v325_v26 = vor.u32 %v324_v18, %v321_v17  ;;  %v330_v32 = vrot.slane %v328_v24, 5  ;;  %v279_v33 = vrot.slane %v277_v36, 4 }
  0x24   : > { %v317_v31 = vsel %vm955_vm2, %v312_v21, %v316_v22  ;;  %v282_v35 = vrot.slane %v280_v37, 5  ;;  %380 = vrot.lane.b32.xlu1 %v702_v15, %s838_s29  ;;  %v233_v38 = vsel %vm955_vm2, %v228_v27, %v232_v62  ;;  %v286_v41 = vshll.u32 %v208_v14, 16  ;;  %v713_v15 = vld [vmem:[%s1065_s2] ss:$0 sm:$0xff] }
  0x25   : > { %v326_v40 = vrot.slane %v325_v26, 4  ;;  %v297_v42 = vor.u32 %v923_v19, %v919_v16  ;;  %v701_v46 = vcombine.low %v233_v38, %v247_v25  ;;  %v300_v48 = vshll.u32 %v210_v29, 16 }
  0x26   : > { %v283_v47 = vor.u32 %v282_v35, %v279_v33  ;;  %v288_v37 = vrot.slane %v286_v41, 5  ;;  %v339_v50 = vor.u32 %v944_v39, %v938_v34  ;;  %v342_v52 = vshll.u32 %v216_v44, 16 }
  0x27   : > { %v331_v36 = vsel %vm955_vm2, %v326_v40, %v330_v32  ;;  %v298_v49 = vrot.slane %v297_v42, 4  ;;  %378 = vrot.lane.b32.xlu0 %v701_v46, %s838_s29  ;;  %v302_v19 = vrot.slane %v300_v48, 5  ;;  %v698_v54 = vcombine.low %v904_v8, %v928_v23 }
  0x28   : > { %v704_v51 = vcombine.low %v317_v31, %v331_v36  ;;  %v284_v16 = vrot.slane %v283_v47, 4  ;;  %v340_v53 = vrot.slane %v339_v50, 4  ;;  %v697_v55 = vcombine.low %v950_v43, %v896_v3 }
  0x29   : > { %v700_v56 = vcombine.low %v893_v2, %v912_v13  ;;  %v303_v39 = vsel %vm955_vm2, %v298_v49, %v302_v19  ;;  %v344_v57 = vrot.slane %v342_v52, 5  ;;  %v699_v58 = vcombine.low %v933_v28, %v890_v1 }
  0x2a   : > { %384 = vrot.lane.b32.xlu1 %v704_v51, %s838_s29  ;;  %v289_v34 = vsel %vm955_vm2, %v284_v16, %v288_v37  ;;  %v711_v23 = vcombine.low %v303_v39, %v317_v31  ;;  %v709_v2 = vcombine.low %v247_v25, %v966_v60 }
  0x2b   : > { %v703_v8 = vcombine.low %v289_v34, %v303_v39  ;;  %v345_v3 = vsel %vm955_vm2, %v340_v53, %v344_v57  ;;  %v710_v43 = vcombine.low %v979_v20, %v289_v34 }
  0x2c   : > { %v712_v13 = vcombine.low %v331_v36, %v345_v3 }
  0x2d   : > { %382 = vrot.lane.b32.xlu0 %v703_v8, %s838_s29 }
  0x2e   : > { %409 = vrot.lane.b32.xlu1 %v711_v23, %s839_s30 }
  0x31   : > { %405 = vrot.lane.b32.xlu0 %v709_v2, %s839_s30 }
  0x32   : > { %411 = vrot.lane.b32.xlu1 %v712_v13, %s839_s30 }
  0x35   : > { %407 = vrot.lane.b32.xlu0 %v710_v43, %s839_s30 }
  0x87   : > { %v397_v1 = vpop.permute.xlu1 %396 }
  0x89   : > { %v393_v28 = vpop.permute.xlu0 %392 }
  0x8d   : > { %v399_v59 = vpop.permute.xlu1 %398 }
  0x8e   : > { %v395_v61 = vpop.permute.xlu0 %394 }
  0x96   : > { %v381_v62 = vpop.permute.xlu1 %380 }
  0x97   : > { %v419_v12 = vsel %vm413_vm3, %v698_v54, %v381_v62 }
  0x98   : > { %v430_v22 = vsel %vm426_vm5, %v419_v12, %v395_v61 }
  0x99   : > { %v379_v63 = vpop.permute.xlu0 %378 }
  0x9a   : > { %v416_v4 = vsel %vm413_vm3, %v697_v55, %v379_v63 }
  0x9b   : > { %v428_v11 = vsel %vm426_vm5, %v416_v4, %v393_v28 }
  0x9c   : > { %v385_v45 = vpop.permute.xlu1 %384 }
  0x9d   : > { %v425_v6 = vsel %vm413_vm3, %v700_v56, %v385_v45 }
  0x9e   : > { %v434_v18 = vsel %vm426_vm5, %v425_v6, %v399_v59 }
  0x9f   : > { %v383_v0 = vpop.permute.xlu0 %382 }
  0xa0   : > { %v422_v60 = vsel %vm413_vm3, %v699_v58, %v383_v0  ;;  %v410_v5 = vpop.permute.xlu1 %409 }
  0xa1   : > { %v432_v7 = vsel %vm426_vm5, %v422_v60, %v397_v1 }
  0xa2   : > { %v441_v9 = vsel %vm435_vm4, %v432_v7, %v410_v5 }
  0xa3   : > { %v406_v10 = vpop.permute.xlu0 %405  ;;  %761 = vmatprep.mubr.msk.bf16.mxu1 %vm483_vm6, %v441_v9 }
  0xa4   : > { %v437_v17 = vsel %vm435_vm4, %v428_v11, %v406_v10  ;;  %v412_v20 = vpop.permute.xlu1 %411 }
  0xa5   : > { %757 = vmatprep.mubr.msk.bf16.mxu0 %vm483_vm6, %v437_v17  ;;  %v443_v21 = vsel %vm435_vm4, %v434_v18, %v412_v20 }
  0xa6   : > { %762 = vmatmul.mubr.msk.bf16.vlgmr.msra.gmra.mrb[0].mxu1 %vm483_vm6, %v443_v21 }
  0xa7   : > { %v408_v24 = vpop.permute.xlu0 %407 }
  0xa8   : > { %v439_v14 = vsel %vm435_vm4, %v430_v22, %v408_v24 }
  0xa9   : > { %758 = vmatmul.mubr.msk.bf16.vlgmr.msra.gmra.mrb[0].mxu0 %vm483_vm6, %v439_v14 }
 0x179   : > { %v763_v27 = vpop.f32.mrb[0].mxu1 }
 0x17a   : > { %v551_v25 = vadd.f32 %v763_v27, %v713_v15  ;;  %v542_v26 = vpop.f32.mrb[1].mxu1 }
 0x17b   : > { %v543_v29 = vadd.f32 %v713_v15, %v542_v26  ;;  %v764_v30 = vpop.f32.mrb[2].mxu1 }
 0x17c   : > { %v759_v31 = vpop.f32.mrb[0].mxu0  ;;  %v563_v32 = vmax.f32 %v551_v25, 0.0  ;;  %v554_v33 = vadd.f32 %v764_v30, %v713_v15  ;;  %v545_v35 = vpop.f32.mrb[3].mxu1 }
 0x17d   : > { %v535_v38 = vadd.f32 %v759_v31, %v713_v15  ;;  %v526_v40 = vpop.f32.mrb[1].mxu0  ;;  %v561_v41 = vmax.f32 %v543_v29, 0.0  ;;  %v546_v42 = vadd.f32 %v713_v15, %v545_v35 }
 0x17e   : > { %v739_v44 = vpack.c.bf16 %v563_v32, %v563_v32  ;;  %v527_v46 = vadd.f32 %v713_v15, %v526_v40  ;;  %v760_v47 = vpop.f32.mrb[2].mxu0  ;;  %v564_v48 = vmax.f32 %v554_v33, 0.0 }
 0x17f   : > { %v559_v36 = vmax.f32 %v535_v38, 0.0  ;;  %v737_v37 = vpack.c.bf16 %v561_v41, %v561_v41  ;;  %v538_v49 = vadd.f32 %v760_v47, %v713_v15  ;;  %v529_v50 = vpop.f32.mrb[3].mxu0  ;;  %v562_v51 = vmax.f32 %v546_v42, 0.0 }
 0x180   : > { %604 = vst.msk [vmem:[%s1036_s9 + $0x18] sm:$0xf] %vm597_vm7, %v739_v44  ;;  %v557_v16 = vmax.f32 %v527_v46, 0.0  ;;  %v740_v19 = vpack.c.bf16 %v564_v48, %v564_v48  ;;  %v530_v52 = vadd.f32 %v713_v15, %v529_v50 }
 0x181   : > { %v735_v53 = vpack.c.bf16 %v559_v36, %v559_v36  ;;  %602 = vst.msk [vmem:[%s1036_s9 + $0x10] sm:$0xf] %vm597_vm7, %v737_v37  ;;  %v560_v54 = vmax.f32 %v538_v49, 0.0  ;;  %v738_v55 = vpack.c.bf16 %v562_v51, %v562_v51 }
 0x182   : > { %v733_v56 = vpack.c.bf16 %v557_v16, %v557_v16  ;;  %605 = vst.msk [vmem:[%s1036_s9 + $0x1c] sm:$0xf] %vm597_vm7, %v740_v19  ;;  %v558_v34 = vmax.f32 %v530_v52, 0.0 }
 0x183   : > { %600 = vst.msk [vmem:[%s1036_s9 + $0x8] sm:$0xf] %vm597_vm7, %v735_v53  ;;  %v736_v39 = vpack.c.bf16 %v560_v54, %v560_v54  ;;  %603 = vst.msk [vmem:[%s1036_s9 + $0x14] sm:$0xf] %vm597_vm7, %v738_v55 }
 0x184   : > { %598 = vst.msk [vmem:[%s1036_s9] sm:$0xf] %vm597_vm7, %v733_v56  ;;  %v734_v57 = vpack.c.bf16 %v558_v34, %v558_v34 }
 0x185   : > { %601 = vst.msk [vmem:[%s1036_s9 + $0xc] sm:$0xf] %vm597_vm7, %v736_v39 }
 0x186   : > { %599 = vst.msk [vmem:[%s1036_s9 + $0x4] sm:$0xf] %vm597_vm7, %v734_v57 }
 0x187 PF: > { %s13_s14 = sadd.s32 1, %s835_s14   ;;  %s1069_s12 = smov %s831_s13 }
 0x188   : > { %p10_p5 = scmp.ge.s32.totalorder %s13_s14, 4   ;;  %s1070_s13 = smov %s1072_s15 }
 0x18a   :  { %12 = sbr.rel (!%p10_p5) target bundleno = 2 (0x2), region = 63 }

// kernel: residual_block_forward.3
= control target key start
LH: loop header
LB: loop body
LE: loop exit
PB: predicated region body
PF: predicated region fallthrough
CT: control target
= control target key end

     0   :  { %s1311_s18 = smov 0   ;;  %s1313_s19 = smov 0   ;;  %s1642_s0 = inlined_call_operand.vmem [shape: bf16[2,10,10,8], index: 0, kind: input, shape index: {}]   ;;  %s1643_s1 = inlined_call_operand.vmem [shape: bf16[72,8], index: 1, kind: input, shape index: {}]   ;;  %s1644_s2 = inlined_call_operand.vmem [shape: f32[1,8], index: 2, kind: input, shape index: {}]   ;;  %s1645_s3 = inlined_call_operand.vmem [shape: bf16[2,64,4], index: 3, kind: input, shape index: {}]   ;;  %s1646_s4 = inlined_call_operand.vmem [shape: bf16[4,8], index: 4, kind: input, shape index: {}]   ;;  %s1647_s5 = inlined_call_operand.vmem [shape: f32[2,64,8], index: 5, kind: output, shape index: {}]  }
   0x1   :  { %s1315_s20 = smov 0  }
   0x2 LB: > { %s27_s21 = sadd.s32 1, %s1267_s19  ;;  %p1073_p0 = scmp.ge.s32.totalorder %s1271_s20, 1  ;;  %s1271_s20 = sphi %s1315_s20, %s15_s20   ;;  %s1267_s19 = sphi %s1313_s19, %s1653_s19   ;;  %s1263_s18 = sphi %s1311_s18, %s1652_s18  }
   0x3   : > { %p29_p1 = scmp.ge.s32.totalorder %s27_s21, 2  ;;  %p218_p2 = scmp.lt.s32.totalorder %s1271_s20, 3 }
   0x5   : > { %s1655_s21 = smov (%p29_p1, %s27_s21), 0  ;;  %p219_p3 = pnand %p1073_p0, %p218_p2 }
   0x6   : > { %p259_p4 = scmp.lt.s32.totalorder (!%p219_p3), %s1263_s18, 1  ;;  %vm440_vm0 = vcmask (!%p219_p3), 1042432   ;;  %vm441_vm1 = vcmask (!%p219_p3), 1046532   ;;  %vm309_vm3 = vsmask.f32 (!%p219_p3), 3328  ;;  %s1273_s26 = smov (!%p219_p3), 24  }
   0x7   : > { %222 = sbr.rel (%p219_p3) target bundleno = 429 (0x1ad), region = 40  ;;  %vm1337_vm2 = vmor (!%p219_p3), %vm440_vm0, %vm441_vm1  ;;  %vm310_vm4 = vsmask.f32 (!%p219_p3), 7440  ;;  %s1274_s27 = smov (!%p219_p3), 16   ;;  %v1240_v51 = vld [vmem:[%s1643_s1] sm:$0xff] (!%p219_p3)   ;;  %vm764_vm6 = vcmask (!%p219_p3), 1043456  }
   0x8   : > { %s1275_s28 = smov (!%p219_p3), 40   ;;  %vm1396_vm5 = vmor (!%p219_p3), %vm309_vm3, %vm310_vm4  ;;  %1152 = vmatprep.subr.bf16.mxu1 (!%p219_p3), %v1240_v51  ;;  %s1276_s10 = smov (!%p219_p3), 8   ;;  %vm875_vm7 = vcmask (!%p219_p3), 1041408   ;;  %vm862_vm8 = vcmask (!%p219_p3), 31744   ;;  %vm636_vm9 = vcmask (!%p219_p3), 64512   ;;  %vm649_vm10 = vcmask (!%p219_p3), 130048  }
   0x9   : > { %1153 = vmatpush3.bf16.msra.mxu1 (!%p219_p3), %v1240_v51  ;;  %s1277_s13 = smov (!%p219_p3), 32   ;;  %s1278_s14 = smov (!%p219_p3), 48   ;;  %vm658_vm11 = vcmask (!%p219_p3), 195584   ;;  %vm667_vm12 = vcmask (!%p219_p3), 261120   ;;  %vm676_vm13 = vcmask (!%p219_p3), 326656   ;;  %vm685_vm14 = vcmask (!%p219_p3), 392192  }
   0xa   : > { %s1279_s23 = smov (!%p219_p3), 56   ;;  %s1280_s7 = smov (!%p219_p3), 64   ;;  %vm694_vm15 = vcmask (!%p219_p3), 457728   ;;  %vm703_vm0 = vcmask (!%p219_p3), 523264   ;;  %vm755_vm1 = vcmask (!%p219_p3), 588800  }
   0xe   : > { %s1657_s18 = smov (!%p259_p4, %s1263_s18), 1 }
   0xf   : > { %s1198_s22 = smul.u32 80, %s1657_s18  ;;  %s1136_s15 = sshll.u32 %s1657_s18, 5 }
  0x11   : > { %s1335_s25 = scalar_lea.vmem %s1642_s0, %s1198_s22  ;;  %s1485_s22 = scalar_lea.vmem %s1645_s3, %s1136_s15 }
  0x12   : > { %v1342_v1 = vld [vmem:[%s1335_s25 + $0x18] sm:$0xf]  ;;  %v1345_v2 = vld [vmem:[%s1335_s25 + $0x20] sm:$0xf]  ;;  %v1348_v3 = vld [vmem:[%s1335_s25 + $0x8] sm:$0xf] }
  0x13   : > { %v1102_v4 = vcombine.low %v1342_v1, %v1345_v2  ;;  %v1353_v5 = vld [vmem:[%s1335_s25 + $0x10] sm:$0xf]  ;;  %v1356_v6 = vld [vmem:[%s1335_s25] sm:$0xf]  ;;  %v290_v7 = vld [vmem:[%s1335_s25 + $0x4] sm:$0x1] }
  0x14   : > { %v1101_v8 = vcombine.low %v1348_v3, %v1353_v5  ;;  %v292_v9 = vld [vmem:[%s1335_s25 + $0xc] sm:$0x1]  ;;  %v1079_v10 = vrot.slane %v1356_v6, 9  ;;  %v445_v11 = vrot.slane %v290_v7, 5  ;;  %v1080_v12 = vrot.slane %v1348_v3, 9 }
  0x15   : > { %574 = vrot.lane.b32.xlu1 %v1102_v4, %s1273_s26  ;;  %v449_v13 = vrot.slane %v292_v9, 5  ;;  %v294_v14 = vld [vmem:[%s1335_s25 + $0x14] sm:$0x1]  ;;  %v1081_v15 = vrot.slane %v1353_v5, 9  ;;  %v1368_v16 = vld [vmem:[%s1335_s25 + $0x1c] sm:$0x1]  ;;  %v1089_v17 = vcombine.low %v1356_v6, %v1348_v3 }
  0x16   : > { %572 = vrot.lane.b32.xlu0 %v1101_v8, %s1273_s26  ;;  %v446_v18 = vsel %vm1337_vm2, %v1079_v10, %v445_v11  ;;  %v453_v19 = vrot.slane %v294_v14, 5  ;;  %v1082_v20 = vrot.slane %v1342_v1, 9  ;;  %v457_v21 = vrot.slane %v1368_v16, 5  ;;  %v298_v30 = vld [vmem:[%s1335_s25 + $0x24] sm:$0x1] }
  0x17   : > { %v450_v22 = vsel %vm1337_vm2, %v1080_v12, %v449_v13  ;;  %v313_v23 = vshrl.u32 %v1356_v6, 16  ;;  %v316_v24 = vshll.u32 %v1356_v6, 16  ;;  %v322_v25 = vshll.u32 %v290_v7, 16  ;;  %v1419_v4 = vld [vmem:[%s1335_s25 + $0x28] sm:$0xf] }
  0x18   : > { %v1097_v26 = vcombine.low %v446_v18, %v450_v22  ;;  %v454_v27 = vsel %vm1337_vm2, %v1081_v15, %v453_v19  ;;  %v458_v28 = vsel %vm1337_vm2, %v1082_v20, %v457_v21  ;;  %v327_v29 = vshrl.u32 %v1348_v3, 16  ;;  %v1241_v7 = vld [vmem:[%s1643_s1 + $0x8] sm:$0xff]  }
  0x19   : > { %v1109_v31 = vcombine.low %v450_v22, %v454_v27  ;;  %v1387_v32 = vcombine.low %v454_v27, %v458_v28  ;;  %v315_v33 = vrot.slane %v313_v23, 4  ;;  %v318_v34 = vrot.slane %v316_v24, 5  ;;  %v1425_v11 = vld [vmem:[%s1335_s25 + $0x2c] sm:$0x1]  ;;  %1154 = vmatprep.subr.bf16.mxu1 %v1241_v7  ;;  %v1242_v27 = vld [vmem:[%s1643_s1 + $0x10] sm:$0xff]  }
  0x1a   : > { %559 = vrot.lane.b32.xlu1 %v1097_v26, %s1274_s27  ;;  %v324_v35 = vrot.slane %v322_v25, 5  ;;  %v329_v36 = vrot.slane %v327_v29, 4  ;;  %v330_v37 = vshll.u32 %v1348_v3, 16  ;;  %v336_v38 = vshll.u32 %v292_v9, 16  ;;  %v1437_v26 = vld [vmem:[%s1335_s25 + $0x38] sm:$0xf]  ;;  %1155 = vmatpush3.bf16.msra.mxu1 %v1241_v7 }
  0x1b   : > { %598 = vrot.lane.b32.xlu0 %v1109_v31, %s1275_s28  ;;  %v319_v39 = vor.u32 %v318_v34, %v315_v33  ;;  %v1083_v40 = vrot.slane %v1345_v2, 9  ;;  %v461_v41 = vrot.slane %v298_v30, 5  ;;  %v341_v42 = vshrl.u32 %v1353_v5, 16  ;;  %1156 = vmatprep.subr.bf16.mxu1 %v1242_v27 }
  0x1c   : > { %v332_v44 = vrot.slane %v330_v37, 5  ;;  %v344_v45 = vshll.u32 %v1353_v5, 16  ;;  %v350_v46 = vshll.u32 %v294_v14, 16  ;;  %v355_v50 = vshrl.u32 %v1342_v1, 16 }
  0x1d   : > { %v320_v47 = vrot.slane %v319_v39, 4  ;;  %v1403_v48 = vsel %vm1337_vm2, %v1083_v40, %v461_v41  ;;  %v343_v49 = vrot.slane %v341_v42, 4  ;;  %v338_v53 = vrot.slane %v336_v38, 5 }
  0x1e   : > { %561 = vrot.lane.b32.xlu1 %v1387_v32, %s1274_s27  ;;  %v333_v52 = vor.u32 %v332_v44, %v329_v36  ;;  %v1110_v54 = vcombine.low %v458_v28, %v1403_v48  ;;  %v346_v55 = vrot.slane %v344_v45, 5  ;;  %v357_v57 = vrot.slane %v355_v50, 4  ;;  %v302_v44 = vld [vmem:[%s1335_s25 + $0x34] sm:$0x1]  ;;  %1157 = vmatpush3.bf16.msra.mxu1 %v1242_v27 }
  0x1f   : > { %v325_v56 = vsel %vm1396_vm5, %v320_v47, %v324_v35  ;;  %v358_v58 = vshll.u32 %v1342_v1, 16  ;;  %v364_v59 = vshll.u32 %v1368_v16, 16  ;;  %v369_v62 = vshrl.u32 %v1345_v2, 16  ;;  %v1431_v16 = vld [vmem:[%s1335_s25 + $0x30] sm:$0xf] }
  0x20   : > { %v334_v60 = vrot.slane %v333_v52, 4  ;;  %v347_v61 = vor.u32 %v346_v55, %v343_v49  ;;  %v372_v63 = vshll.u32 %v1345_v2, 16  ;;  %v352_v8 = vrot.slane %v350_v46, 5  ;;  %v1243_v46 = vld [vmem:[%s1643_s1 + $0x18] sm:$0xff]  }
  0x21   : > { %v360_v9 = vrot.slane %v358_v58, 5  ;;  %v378_v10 = vshll.u32 %v298_v30, 16  ;;  %v371_v14 = vrot.slane %v369_v62, 4  ;;  %v366_v20 = vrot.slane %v364_v59, 5  ;;  %v304_v49 = vld [vmem:[%s1335_s25 + $0x3c] sm:$0x1]  ;;  %1158 = vmatprep.subr.bf16.mxu1 %v1243_v46 }
  0x22   : > { %v339_v12 = vsel %vm1396_vm5, %v334_v60, %v338_v53  ;;  %600 = vrot.lane.b32.xlu1 %v1110_v54, %s1275_s28  ;;  %v348_v13 = vrot.slane %v347_v61, 4  ;;  %v374_v15 = vrot.slane %v372_v63, 5  ;;  %v383_v21 = vshrl.u32 %v1419_v4, 16  ;;  %1159 = vmatpush3.bf16.msra.mxu1 %v1243_v46  ;;  %v1469_v61 = vld [vmem:[%s1335_s25 + $0x40] sm:$0xf] }
  0x23   : > { %v1093_v18 = vcombine.low %v325_v56, %v339_v12  ;;  %v361_v19 = vor.u32 %v360_v9, %v357_v57  ;;  %v380_v23 = vrot.slane %v378_v10, 5  ;;  %v386_v24 = vshll.u32 %v1419_v4, 16 }
  0x24   : > { %v375_v22 = vor.u32 %v374_v15, %v371_v14  ;;  %v392_v25 = vshll.u32 %v1425_v11, 16  ;;  %v353_v28 = vsel %vm1396_vm5, %v348_v13, %v352_v8  ;;  %v385_v30 = vrot.slane %v383_v21, 4 }
  0x25   : > { %539 = vrot.lane.b32.xlu0 %v1093_v18, %s1276_s10  ;;  %v362_v29 = vrot.slane %v361_v19, 4  ;;  %v397_v31 = vshrl.u32 %v1431_v16, 16  ;;  %v388_v34 = vrot.slane %v386_v24, 5  ;;  %v400_v35 = vshll.u32 %v1431_v16, 16 }
  0x26   : > { %v376_v33 = vrot.slane %v375_v22, 4  ;;  %v394_v37 = vrot.slane %v392_v25, 5  ;;  %v411_v39 = vshrl.u32 %v1437_v26, 16  ;;  %v414_v51 = vshll.u32 %v1437_v26, 16 }
  0x27   : > { %v367_v36 = vsel %vm1396_vm5, %v362_v29, %v366_v20  ;;  %v399_v38 = vrot.slane %v397_v31, 4  ;;  %v389_v42 = vor.u32 %v388_v34, %v385_v30  ;;  %v402_v45 = vrot.slane %v400_v35, 5  ;;  %v841_v31 = vld [vmem:[%s1646_s4] sm:$0x3]  ;;  %v307_v34 = vld [vmem:[%s1335_s25 + $0x48] sm:$0xf] }
  0x28   : > { %v1094_v40 = vcombine.low %v353_v28, %v367_v36  ;;  %v381_v41 = vsel %vm1396_vm5, %v376_v33, %v380_v23  ;;  %v413_v50 = vrot.slane %v411_v39, 4  ;;  %v1105_v52 = vcombine.low %v339_v12, %v353_v28  ;;  %v1244_v23 = vld [vmem:[%s1643_s1 + $0x20] ss:$0 sps:$4 sm:$0xff]   ;;  %1197 = vmatprep.subr.msk.bf16.mxu0 %vm875_vm7, %v841_v31 }
  0x29   : > { %v1106_v47 = vcombine.low %v367_v36, %v381_v41  ;;  %v390_v53 = vrot.slane %v389_v42, 4  ;;  %v1462_v54 = vcombine.low %v1345_v2, %v1419_v4  ;;  %v403_v55 = vor.u32 %v402_v45, %v399_v38  ;;  %v1245_v33 = vld [vmem:[%s1485_s22] sm:$0xff]   ;;  %1196 = vmatprep.subr.msk.bf16.mxu1 %vm764_vm6, %v1244_v23 }
  0x2a   : > { %541 = vrot.lane.b32.xlu0 %v1094_v40, %s1276_s10  ;;  %v406_v56 = vshll.u32 %v302_v44, 16  ;;  %v416_v57 = vrot.slane %v414_v51, 5  ;;  %v420_v59 = vshll.u32 %v304_v49, 16  ;;  %v1474_v62 = vcombine.low %v1353_v5, %v1342_v1  ;;  %1172 = vmatprep.mubr.msk.bf16.mxu0 %vm862_vm8, %v1245_v33 }
  0x2b   : > { %587 = vrot.lane.b32.xlu1 %v1106_v47, %s1277_s13  ;;  %v1466_v58 = vsel %vm1396_vm5, %v390_v53, %v394_v37  ;;  %v404_v63 = vrot.slane %v403_v55, 4  ;;  %v476_v10 = vshrl.u32 %v1469_v61, 16  ;;  %v479_v12 = vshll.u32 %v1469_v61, 16 }
  0x2c   : > { %v417_v60 = vor.u32 %v416_v57, %v413_v50  ;;  %v1095_v2 = vcombine.low %v381_v41, %v1466_v58  ;;  %v408_v7 = vrot.slane %v406_v56, 5  ;;  %v422_v9 = vrot.slane %v420_v59, 5  ;;  %v308_v50 = vld [vmem:[%s1335_s25 + $0x4c] sm:$0x1] }
  0x2d   : > { %v1084_v1 = vrot.slane %v1419_v4, 9  ;;  %v465_v5 = vrot.slane %v1425_v11, 5  ;;  %v1085_v13 = vrot.slane %v1431_v16, 9  ;;  %v469_v14 = vrot.slane %v302_v44, 5  ;;  %v306_v11 = vld [vmem:[%s1335_s25 + $0x44] sm:$0x1] }
  0x2e   : > { %585 = vrot.lane.b32.xlu0 %v1105_v52, %s1277_s13  ;;  %v418_v8 = vrot.slane %v417_v60, 4  ;;  %v1086_v15 = vrot.slane %v1437_v26, 9  ;;  %v473_v18 = vrot.slane %v304_v49, 5  ;;  %v409_v19 = vsel %vm1396_vm5, %v404_v63, %v408_v7  ;;  %v1247_v7 = vld [vmem:[%s1485_s22 + $0x10] sm:$0xff]  }
  0x2f   : > { %610 = vrot.lane.b32.xlu1 %v1462_v54, %s1278_s14  ;;  %v478_v21 = vrot.slane %v476_v10, 4  ;;  %v481_v22 = vrot.slane %v479_v12, 5  ;;  %v466_v25 = vsel %vm1337_vm2, %v1084_v1, %v465_v5  ;;  %v470_v27 = vsel %vm1337_vm2, %v1085_v13, %v469_v14  ;;  %v1248_v12 = vld [vmem:[%s1485_s22 + $0x18] sm:$0xff]  }
  0x30   : > { %v423_v20 = vsel %vm1396_vm5, %v418_v8, %v422_v9  ;;  %v474_v28 = vsel %vm1337_vm2, %v1086_v15, %v473_v18  ;;  %v485_v30 = vshll.u32 %v306_v11, 16  ;;  %v1099_v35 = vcombine.low %v1403_v48, %v466_v25 }
  0x31   : > { %v1504_v24 = vcombine.low %v409_v19, %v423_v20  ;;  %v482_v29 = vor.u32 %v481_v22, %v478_v21  ;;  %v766_v36 = vsel %vm764_vm6, %v1244_v23, 0  ;;  %v1100_v37 = vcombine.low %v470_v27, %v474_v28 }
  0x32   : > { %608 = vrot.lane.b32.xlu0 %v1474_v62, %s1278_s14  ;;  %1161 = vmatpush3.bf16.msra.mxu1 %v766_v36  ;;  %v877_v38 = vsel %vm875_vm7, %v841_v31, 0  ;;  %v496_v41 = vshrl.u32 %v307_v34, 16  ;;  %v499_v42 = vshll.u32 %v307_v34, 16  ;;  %v1104_v48 = vcombine.low %v1437_v26, %v1469_v61 }
  0x33   : > { %620 = vrot.lane.b32.xlu1 %v1095_v2, %s1279_s23  ;;  %v483_v39 = vrot.slane %v482_v29, 4  ;;  %1171 = vmatpush3.bf16.msra.mxu0 %v877_v38  ;;  %v1087_v44 = vrot.slane %v1469_v61, 9  ;;  %v493_v46 = vrot.slane %v306_v11, 5  ;;  %v1103_v51 = vcombine.low %v1419_v4, %v1431_v16 }
  0x34   : > { %v498_v47 = vrot.slane %v496_v41, 4  ;;  %v501_v49 = vrot.slane %v499_v42, 5  ;;  %v505_v56 = vshll.u32 %v308_v50, 16  ;;  %v1107_v57 = vcombine.low %v1466_v58, %v409_v19 }
  0x35   : > { %v494_v53 = vsel %vm1337_vm2, %v1087_v44, %v493_v46  ;;  %v1111_v4 = vcombine.low %v466_v25, %v470_v27  ;;  %v1113_v63 = vcombine.low %v1469_v61, %v307_v34  ;;  %v1088_v9 = vrot.slane %v307_v34, 9 }
  0x36   : > { %618 = vrot.lane.b32.xlu0 %v1094_v40, %s1279_s23  ;;  %v487_v40 = vrot.slane %v485_v30, 5  ;;  %v502_v55 = vor.u32 %v501_v49, %v498_v47  ;;  %v1112_v59 = vcombine.low %v474_v28, %v494_v53  ;;  %v513_v10 = vrot.slane %v308_v50, 5 }
  0x37   : > { %543 = vrot.lane.b32.xlu1 %v1095_v2, %s1276_s10  ;;  %v507_v2 = vrot.slane %v505_v56, 5  ;;  %v1553_v58 = vcombine.low %v1431_v16, %v1437_v26 }
  0x38   : > { %v488_v45 = vsel %vm1396_vm5, %v483_v39, %v487_v40  ;;  %v503_v60 = vrot.slane %v502_v55, 4  ;;  %v514_v43 = vsel %vm1337_vm2, %v1088_v9, %v513_v10 }
  0x39   : > { %v1108_v52 = vcombine.low %v423_v20, %v488_v45  ;;  %v1115_v1 = vcombine.low %v494_v53, %v514_v43 }
  0x3a   : > { %628 = vrot.lane.b32.xlu0 %v1387_v32, %s1280_s7  ;;  %v1246_v32 = vld [vmem:[%s1485_s22 + $0x8] sm:$0xff]   ;;  %v508_v8 = vsel %vm1396_vm5, %v503_v60, %v507_v2 }
  0x3b   : > { %545 = vrot.lane.b32.xlu1 %v1504_v24, %s1276_s10  ;;  %1173 = vmatmul.mubr.msk.bf16.vlgmr.msra.gmra.mrb[0].mxu0 %vm862_vm8, %v1246_v32  ;;  %v1114_v61 = vcombine.low %v488_v45, %v508_v8 }
  0x3c   : > { %1176 = vmatprep.mubr.msk.bf16.mxu0 %vm862_vm8, %v1247_v7 }
  0x3e   : > { %630 = vrot.lane.b32.xlu0 %v1099_v35, %s1280_s7 }
  0x3f   : > { %565 = vrot.lane.b32.xlu1 %v1100_v37, %s1274_s27 }
  0x42   : > { %563 = vrot.lane.b32.xlu0 %v1099_v35, %s1274_s27  ;;  %s1137_s27 = sshll.u32 %s1657_s18, 6 }
  0x43   : > { %578 = vrot.lane.b32.xlu1 %v1104_v48, %s1273_s26  ;;  %1177 = vmatmul.mubr.msk.bf16.gmra.mrb[4].mxu0 %vm862_vm8, %v1248_v12  ;;  %s1615_s9 = scalar_lea.vmem %s1647_s5, %s1137_s27 }
  0x46   : > { %576 = vrot.lane.b32.xlu0 %v1103_v51, %s1273_s26 }
  0x47   : > { %591 = vrot.lane.b32.xlu1 %v1108_v52, %s1277_s13 }
  0x4a   : > { %589 = vrot.lane.b32.xlu0 %v1107_v57, %s1277_s13 }
  0x4b   : > { %604 = vrot.lane.b32.xlu1 %v1112_v59, %s1275_s28 }
  0x4e   : > { %602 = vrot.lane.b32.xlu0 %v1111_v4, %s1275_s28 }
  0x4f   : > { %614 = vrot.lane.b32.xlu1 %v1113_v63, %s1278_s14 }
  0x52   : > { %612 = vrot.lane.b32.xlu0 %v1553_v58, %s1278_s14 }
  0x53   : > { %624 = vrot.lane.b32.xlu1 %v1114_v61, %s1279_s23 }
  0x56   : > { %622 = vrot.lane.b32.xlu0 %v1504_v24, %s1279_s23 }
  0x57   : > { %634 = vrot.lane.b32.xlu1 %v1115_v1, %s1280_s7 }
  0x5a   : > { %632 = vrot.lane.b32.xlu0 %v1100_v37, %s1280_s7 }
  0x87   : > { %v575_v16 = vpop.permute.xlu1 %574 }
  0x88   : > { %v573_v26 = vpop.permute.xlu0 %572 }
  0x8c   : > { %v560_v5 = vpop.permute.xlu1 %559 }
  0x8d   : > { %v599_v13 = vpop.permute.xlu0 %598 }
  0x90   : > { %v562_v14 = vpop.permute.xlu1 %561 }
  0x94   : > { %v601_v15 = vpop.permute.xlu1 %600 }
  0x97   : > { %v540_v0 = vpop.permute.xlu0 %539 }
  0x98   : > { %v639_v20 = vsel %vm636_vm9, %v1089_v17, %v540_v0 }
  0x99   : > { %v651_v23 = vsel %vm649_vm10, %v639_v20, %v560_v5 }
  0x9a   : > { %v660_v28 = vsel %vm658_vm11, %v651_v23, %v573_v26 }
  0x9c   : > { %v542_v18 = vpop.permute.xlu0 %541 }
  0x9d   : > { %v588_v19 = vpop.permute.xlu1 %587  ;;  %v642_v11 = vsel %vm636_vm9, %v1474_v62, %v542_v18 }
  0x9e   : > { %v653_v25 = vsel %vm649_vm10, %v642_v11, %v562_v14 }
  0x9f   : > { %v662_v3 = vsel %vm658_vm11, %v653_v25, %v575_v16 }
  0xa0   : > { %v586_v21 = vpop.permute.xlu0 %585  ;;  %v671_v30 = vsel %vm667_vm12, %v662_v3, %v588_v19  ;;  %v1116_v19 = vld [vmem:[%s1644_s2] ss:$0 sm:$0xff] }
  0xa1   : > { %v611_v22 = vpop.permute.xlu1 %610  ;;  %v669_v29 = vsel %vm667_vm12, %v660_v28, %v586_v21  ;;  %v680_v37 = vsel %vm676_vm13, %v671_v30, %v601_v15 }
  0xa2   : > { %v678_v62 = vsel %vm676_vm13, %v669_v29, %v599_v13  ;;  %v689_v38 = vsel %vm685_vm14, %v680_v37, %v611_v22 }
  0xa4   : > { %v609_v24 = vpop.permute.xlu0 %608 }
  0xa5   : > { %v621_v27 = vpop.permute.xlu1 %620  ;;  %v687_v31 = vsel %vm685_vm14, %v678_v62, %v609_v24 }
  0xa6   : > { %v698_v39 = vsel %vm694_vm15, %v689_v38, %v621_v27 }
  0xa8   : > { %v619_v6 = vpop.permute.xlu0 %618 }
  0xa9   : > { %v544_v17 = vpop.permute.xlu1 %543  ;;  %v696_v33 = vsel %vm694_vm15, %v687_v31, %v619_v6 }
  0xaa   : > { %v645_v55 = vsel %vm636_vm9, %v1462_v54, %v544_v17 }
  0xac   : > { %v629_v34 = vpop.permute.xlu0 %628 }
  0xad   : > { %v705_v35 = vsel %vm703_vm0, %v696_v33, %v629_v34  ;;  %v546_v36 = vpop.permute.xlu1 %545 }
  0xae   : > { %1162 = vmatprep.mubr.msk.bf16.mxu1 %vm755_vm1, %v705_v35  ;;  %v648_v52 = vsel %vm636_vm9, %v1553_v58, %v546_v36 }
  0xb0   : > { %v631_v40 = vpop.permute.xlu0 %630 }
  0xb1   : > { %v707_v41 = vsel %vm703_vm0, %v698_v39, %v631_v40  ;;  %v566_v42 = vpop.permute.xlu1 %565 }
  0xb2   : > { %1163 = vmatmul.mubr.msk.bf16.vlgmr.msra.gmra.mrb[0].mxu1 %vm755_vm1, %v707_v41  ;;  %v657_v57 = vsel %vm649_vm10, %v648_v52, %v566_v42 }
  0xb4   : > { %v564_v32 = vpop.permute.xlu0 %563 }
  0xb5   : > { %v579_v48 = vpop.permute.xlu1 %578  ;;  %v655_v56 = vsel %vm649_vm10, %v645_v55, %v564_v32 }
  0xb6   : > { %v666_v2 = vsel %vm658_vm11, %v657_v57, %v579_v48 }
  0xb8   : > { %v577_v44 = vpop.permute.xlu0 %576 }
  0xb9   : > { %v592_v45 = vpop.permute.xlu1 %591  ;;  %v664_v59 = vsel %vm658_vm11, %v655_v56, %v577_v44 }
  0xba   : > { %v675_v63 = vsel %vm667_vm12, %v666_v2, %v592_v45 }
  0xbc   : > { %v590_v46 = vpop.permute.xlu0 %589 }
  0xbd   : > { %v605_v47 = vpop.permute.xlu1 %604  ;;  %v673_v4 = vsel %vm667_vm12, %v664_v59, %v590_v46 }
  0xbe   : > { %v684_v8 = vsel %vm676_vm13, %v675_v63, %v605_v47 }
  0xc0   : > { %v603_v49 = vpop.permute.xlu0 %602 }
  0xc1   : > { %v615_v50 = vpop.permute.xlu1 %614  ;;  %v682_v7 = vsel %vm676_vm13, %v673_v4, %v603_v49 }
  0xc2   : > { %v693_v10 = vsel %vm685_vm14, %v684_v8, %v615_v50 }
  0xc4   : > { %v613_v51 = vpop.permute.xlu0 %612 }
  0xc5   : > { %v625_v53 = vpop.permute.xlu1 %624  ;;  %v691_v9 = vsel %vm685_vm14, %v682_v7, %v613_v51 }
  0xc6   : > { %v702_v61 = vsel %vm694_vm15, %v693_v10, %v625_v53 }
  0xc8   : > { %v623_v60 = vpop.permute.xlu0 %622 }
  0xc9   : > { %v635_v54 = vpop.permute.xlu1 %634  ;;  %v700_v12 = vsel %vm694_vm15, %v691_v9, %v623_v60 }
  0xca   : > { %v711_v1 = vsel %vm703_vm0, %v702_v61, %v635_v54 }
  0xcc   : > { %v633_v58 = vpop.permute.xlu0 %632 }
  0xcd   : > { %v709_v43 = vsel %vm703_vm0, %v700_v12, %v633_v58 }
  0xce   : > { %1166 = vmatprep.mubr.msk.bf16.mxu1 %vm755_vm1, %v709_v43 }
  0xcf   : > { %1167 = vmatmul.mubr.msk.bf16.gmra.mrb[4].mxu1 %vm755_vm1, %v711_v1 }
 0x10e   : > { %v1174_v16 = vpop.f32.mrb[0].mxu0 }
 0x10f   : > { %v913_v26 = vpop.f32.mrb[1].mxu0 }
 0x110   : > { %v1175_v5 = vpop.f32.mrb[2].mxu0 }
 0x111   : > { %v916_v13 = vpop.f32.mrb[3].mxu0 }
 0x116   : > { %v1178_v14 = vpop.f32.mrb[4].mxu0 }
 0x117   : > { %v929_v0 = vpop.f32.mrb[5].mxu0 }
 0x118   : > { %v1179_v15 = vpop.f32.mrb[6].mxu0 }
 0x119   : > { %v932_v18 = vpop.f32.mrb[7].mxu0 }
 0x185   : > { %v1164_v20 = vpop.f32.mrb[0].mxu1 }
 0x186   : > { %v811_v21 = vadd.f32 %v1164_v20, %v1116_v19  ;;  %v802_v22 = vpop.f32.mrb[1].mxu1 }
 0x187   : > { %v803_v11 = vadd.f32 %v1116_v19, %v802_v22  ;;  %v1165_v23 = vpop.f32.mrb[2].mxu1 }
 0x188   : > { %v814_v24 = vadd.f32 %v1165_v23, %v1116_v19  ;;  %v946_v25 = vadd.f32 %v1174_v16, %v811_v21  ;;  %v805_v27 = vpop.f32.mrb[3].mxu1 }
 0x189   : > { %v806_v28 = vadd.f32 %v1116_v19, %v805_v27  ;;  %v944_v29 = vadd.f32 %v913_v26, %v803_v11 }
 0x18a   : > { %v954_v3 = vmax.f32 %v946_v25, 0.0  ;;  %v947_v6 = vadd.f32 %v1175_v5, %v814_v24 }
 0x18b   : > { %v952_v17 = vmax.f32 %v944_v29, 0.0  ;;  %v945_v62 = vadd.f32 %v916_v13, %v806_v28 }
 0x18c   : > { %962 = vst.msk [vmem:[%s1615_s9 + $0x10] sm:$0xff] %vm636_vm9, %v954_v3  ;;  %v955_v30 = vmax.f32 %v947_v6, 0.0 }
 0x18d   : > { %960 = vst.msk [vmem:[%s1615_s9] sm:$0xff] %vm636_vm9, %v952_v17  ;;  %v953_v31 = vmax.f32 %v945_v62, 0.0 }
 0x18e   : > { %963 = vst.msk [vmem:[%s1615_s9 + $0x18] sm:$0xff] %vm636_vm9, %v955_v30 }
 0x18f   : > { %961 = vst.msk [vmem:[%s1615_s9 + $0x8] sm:$0xff] %vm636_vm9, %v953_v31 }
 0x1a2   : > { %v1168_v33 = vpop.f32.mrb[4].mxu1 }
 0x1a3   : > { %v827_v34 = vadd.f32 %v1168_v33, %v1116_v19  ;;  %v818_v35 = vpop.f32.mrb[5].mxu1 }
 0x1a4   : > { %v819_v36 = vadd.f32 %v1116_v19, %v818_v35  ;;  %v1169_v37 = vpop.f32.mrb[6].mxu1 }
 0x1a5   : > { %v950_v38 = vadd.f32 %v1178_v14, %v827_v34  ;;  %v830_v39 = vadd.f32 %v1169_v37, %v1116_v19  ;;  %v821_v40 = vpop.f32.mrb[7].mxu1 }
 0x1a6   : > { %v948_v41 = vadd.f32 %v929_v0, %v819_v36  ;;  %v822_v42 = vadd.f32 %v1116_v19, %v821_v40 }
 0x1a7   : > { %v958_v32 = vmax.f32 %v950_v38, 0.0  ;;  %v951_v48 = vadd.f32 %v1179_v15, %v830_v39 }
 0x1a8   : > { %v956_v44 = vmax.f32 %v948_v41, 0.0  ;;  %v949_v45 = vadd.f32 %v932_v18, %v822_v42 }
 0x1a9   : > { %966 = vst.msk [vmem:[%s1615_s9 + $0x30] sm:$0xff] %vm636_vm9, %v958_v32  ;;  %v959_v46 = vmax.f32 %v951_v48, 0.0 }
 0x1aa   : > { %964 = vst.msk [vmem:[%s1615_s9 + $0x20] sm:$0xff] %vm636_vm9, %v956_v44  ;;  %v957_v47 = vmax.f32 %v949_v45, 0.0 }
 0x1ab   : > { %967 = vst.msk [vmem:[%s1615_s9 + $0x38] sm:$0xff] %vm636_vm9, %v959_v46 }
 0x1ac   : > { %965 = vst.msk [vmem:[%s1615_s9 + $0x28] sm:$0xff] %vm636_vm9, %v957_v47 }
 0x1ad PF: > { %s15_s20 = sadd.s32 1, %s1271_s20   ;;  %s1652_s18 = smov %s1267_s19 }
 0x1ae   : > { %p12_p5 = scmp.ge.s32.totalorder %s15_s20, 4   ;;  %s1653_s19 = smov %s1655_s21 }
 0x1b0   :  { %14 = sbr.rel (!%p12_p5) target bundleno = 2 (0x2), region = 74 }

</bundles_post_ra>
